<compile_context>
chip_gen: v7x
topology: tpu7x:2x2x1
jax: 0.10.0
libtpu: 0.0.40
codegen_flags: <defaults>
</compile_context>

<pallas_src>
import math

import jax
import jax.numpy as jnp
from jax import lax
from jax.experimental import pallas as pl
from jax.experimental.pallas import tpu as pltpu

# Hard cap on pixels (matmul rows) per grid step.
MAX_TILE_HW = 2048
# Minimum desired grid-product so v7x's two TensorCores (and the software
# pipeline) always have work; harmless on single-TC v5e/v6e.
MIN_GRID_PROGRAMS = 4


def _tpu_vmem_capacity_bytes() -> int:
    """Physical VMEM per core; fall back to the smallest generation (v7x)."""
    try:
        return int(pltpu.get_tpu_info().vmem_capacity_bytes)
    except Exception:
        return 64 * 1024 * 1024


def _pick_tile(hw: int, batch: int, max_rows_by_vmem: int) -> int:
    """Pixels per grid step: a multiple of 128 (lane dim of the input block)
    or the full spatial extent, sized to the VMEM budget and split so the
    grid has enough programs for megacore / v7x dual-TC sharding."""
    tile = min(MAX_TILE_HW, max(128, (max_rows_by_vmem // 128) * 128))
    want_tiles = -(-MIN_GRID_PROGRAMS // max(batch, 1))        # ceil
    if want_tiles > 1 and hw > 128:
        per = -(-hw // want_tiles)                             # ceil(hw/want)
        per = -(-per // 128) * 128                             # round up 128
        tile = min(tile, per)
    if tile >= hw:
        return hw                                              # full dim legal
    return max(tile, 128)


def _make_kernel(n_adapt: int):
    def kernel(*refs):
        x_ref = refs[0]                          # (C_in, TILE_HW) block
        w_refs = refs[1:1 + n_adapt]             # (C_in, C_out_i) each
        o_refs = refs[1 + n_adapt:]              # (TILE_HW, C_out_i) each
        for w_ref, o_ref in zip(w_refs, o_refs):
            # Load x inside the loop so the (C, tile) block is not kept live
            # across the whole static Python loop (avoids spills).
            # Contract the channel axis (LHS axis 0 with RHS axis 0): the MXU
            # emits the rearranged (pixels, C_out) tile directly.
            # TODO(synk): if lowered MLIR shows a materialized transpose of
            # the (C, tile) operand on the critical unit at large C, switch to
            # a pre-transposed activation tile or pl.dot with transpose flags.
            y = lax.dot_general(
                x_ref[...], w_ref[...],
                dimension_numbers=(((0,), (0,)), ((), ())),
                preferred_element_type=jnp.float32,
            )
            # TODO(synk): precision=lax.Precision.HIGHEST would give
            # bit-closer parity with f32 PyTorch Conv2d for free (mem-bound).
            o_ref[...] = y.astype(o_ref.dtype)
    return kernel


def fused_conv1x1_rearrange(x_nchw: jax.Array, weights) -> list:
    """Apply N bias-free 1x1 convs (as matmuls) to one NCHW activation.

    Returns [ (B, H*W, C_out_i) for each weight ]: conv followed by the
    'b c h w -> b (h w) c' rearrange, reading the activation from HBM once.
    """
    B, C, H, W = x_nchw.shape
    HW = H * W
    x = x_nchw.reshape(B, C, HW)                 # contiguous reshape: free
    itemsize = jnp.dtype(x.dtype).itemsize
    # Run the matmul in the activation dtype (bf16 stays bf16 end-to-end);
    # accumulation is f32 via preferred_element_type.  Weight casts are tiny.
    weights = [w.astype(x.dtype) for w in weights]

    cout_total = sum(int(w.shape[1]) for w in weights)
    weight_bytes = sum(int(w.size) for w in weights) * itemsize

    # ---- generation-aware VMEM budget --------------------------------------
    cap = _tpu_vmem_capacity_bytes()
    budget = min(int(cap * 0.55), 40 * 1024 * 1024)
    # The pipeline double-buffers every operand; the constant-index weights
    # still get 2 buffers reserved, so subtract them from the activation
    # budget.  TODO(synk): pipeline_mode=pl.Buffered(1) (or persistent VMEM
    # scratch) for the weights once verified on the target jax version.
    act_budget = max(budget - 2 * weight_bytes, 1 * 1024 * 1024)
    bytes_per_pixel = (C + cout_total) * itemsize * 2          # 2 = dbl buffer
    tile = _pick_tile(HW, B, act_budget // bytes_per_pixel)
    grid = (B, pl.cdiv(HW, tile))

    in_specs = [pl.BlockSpec((None, C, tile), lambda b, j: (b, 0, j))]
    out_specs, out_shape = [], []
    for w in weights:
        cin, cout = w.shape
        assert cin == C, "adapter weight does not match input channels"
        in_specs.append(pl.BlockSpec((cin, cout), lambda b, j: (0, 0)))
        out_specs.append(pl.BlockSpec((None, tile, cout), lambda b, j: (b, j, 0)))
        out_shape.append(jax.ShapeDtypeStruct((B, HW, cout), x.dtype))

    footprint = 2 * (C + cout_total) * tile * itemsize + 2 * weight_bytes
    vmem_limit = int(min(cap * 0.75,
                         max(32 * 1024 * 1024, footprint + (8 << 20))))

    cost = pl.CostEstimate(
        flops=2 * B * HW * C * cout_total,
        transcendentals=0,
        bytes_accessed=(int(x.size) + sum(int(w.size) for w in weights)
                        + B * HW * cout_total) * itemsize,
    )

    outs = pl.pallas_call(
        _make_kernel(len(weights)),
        grid=grid,
        in_specs=in_specs,
        out_specs=out_specs,
        out_shape=out_shape,
        compiler_params=pltpu.CompilerParams(
            dimension_semantics=("parallel", "parallel"),
            vmem_limit_bytes=vmem_limit),
        cost_estimate=cost,
    )(x, *weights)
    return list(outs)


def _identity_rearrange(x_nchw: jax.Array) -> jax.Array:
    # nn.Identity followed by 'b c h w -> b (h w) c' (exact, no matmul).
    B, C, H, W = x_nchw.shape
    return jnp.transpose(x_nchw.reshape(B, C, H * W), (0, 2, 1))


class AdapterPallas:
    """JAX/Pallas re-implementation of the PyTorch `Adapter` forward pass for
    the 4-D pattern 'b c h w -> b (h w) c' (1x1 Conv2d adapters)."""

    def __init__(self, pattern, qry_dim, key_dim=None, val_dim=None,
                 emb_dim=None, *, rng_key):
        if isinstance(pattern, str):
            pattern = (pattern,) * 3
        if len(pattern) == 2:
            pattern = (*pattern, pattern[-1])
        key_dim = qry_dim if key_dim is None else key_dim
        val_dim = qry_dim if val_dim is None else val_dim
        emb_dim = qry_dim if emb_dim is None else emb_dim
        self.pattern = pattern
        self.emb_dim = emb_dim

        kq, kk, kv, kr = jax.random.split(rng_key, 4)
        self.w_q = self._make_weight(kq, qry_dim, emb_dim)
        self.w_k = self._make_weight(kk, key_dim, emb_dim)
        self.w_v = self._make_weight(kv, val_dim, emb_dim)
        # from_q is only used by `restore` -- initialized for parameter parity.
        self.w_from_q = self._make_weight(kr, emb_dim, qry_dim)

    @staticmethod
    def _make_weight(key, chn_inp, chn_out):
        if chn_inp == chn_out:
            return None                          # nn.Identity
        # PyTorch Conv2d default init: kaiming_uniform(a=sqrt(5)) ->
        # U(-1/sqrt(fan_in), 1/sqrt(fan_in)) with fan_in = chn_inp * 1 * 1.
        bound = 1.0 / math.sqrt(chn_inp)
        # Stored as (C_in, C_out), i.e. torch weight[:, :, 0, 0].T
        return jax.random.uniform(key, (chn_inp, chn_out), minval=-bound,
                                  maxval=bound, dtype=jnp.float32)

    def forward(self, qry, key=None, val=None):
        fused = (key is None or key is qry) and (val is None or val is qry)
        key = qry if key is None else key
        val = qry if val is None else val
        inputs = (qry, key, val)
        weights = (self.w_q, self.w_k, self.w_v)
        outs = [None, None, None]

        live = [i for i in range(3) if weights[i] is not None]
        if fused and live:
            # Common case: one kernel launch, activation read from HBM once.
            res = fused_conv1x1_rearrange(qry, [weights[i] for i in live])
            for i, r in zip(live, res):
                outs[i] = r
        else:
            # TODO(synk): distinct qry/key/val could be fused by batching the
            # inputs along the pixel axis; kept as separate single-pass calls.
            for i in live:
                outs[i] = fused_conv1x1_rearrange(inputs[i], [weights[i]])[0]

        for i in range(3):
            if outs[i] is None:                  # nn.Identity adapter
                # TODO(synk): when a conv adapter shares this input, the
                # identity rearrange could be emitted from the same kernel
                # (transposed store of the resident block) to save one HBM
                # pass; kept as an exact XLA transpose (corner-case config).
                outs[i] = _identity_rearrange(inputs[i])

        # PyTorch stores the conv output's NCHW shape before the rearrange.
        # (Static python ints; mutating self is still a side effect under jit.)
        B, _, H, W = qry.shape
        self.q_shape = (B, self.emb_dim, H, W)
        # TODO(synk): `restore` (inverse rearrange + from_q conv) is not on the
        # forward hot path and is not implemented here.
        return tuple(outs)


def _reference_adapter(x, w):
    # Pure-JAX f32 reference: 1x1 conv on NCHW then 'b c h w -> b (h w) c'.
    x = x.astype(jnp.float32)
    if w is not None:
        x = jnp.einsum("bchw,ce->behw", x, w.astype(jnp.float32))
    B, C, H, W = x.shape
    return jnp.transpose(x, (0, 2, 3, 1)).reshape(B, H * W, C)


if __name__ == "__main__":
    root = jax.random.PRNGKey(0)
    k_param, k_param2, k_q, k_k, k_v, k_r, k_b = jax.random.split(root, 7)

    B, C, H, W = 2, 4, 16, 16
    EMB = 8

    adapter = AdapterPallas("b c h w -> b (h w) c", qry_dim=C, emb_dim=EMB,
                            rng_key=k_param)

    qry = jax.random.normal(k_q, (B, C, H, W), dtype=jnp.float32)
    key = jax.random.normal(k_k, (B, C, H, W), dtype=jnp.float32)
    val = jax.random.normal(k_v, (B, C, H, W), dtype=jnp.float32)

    # Tolerance allows for the MXU's default-precision f32 matmul (operands
    # rounded to bf16); a layout/indexing bug would show as O(1) errors.
    tol = dict(atol=5e-2, rtol=1e-2)

    # 1) Common path: key/val default to qry -> single fused kernel launch.
    q0, k0, v0 = adapter.forward(qry)
    assert adapter.q_shape == (B, EMB, H, W)
    # 2) Distinct qry/key/val inputs.
    q1, k1, v1 = adapter.forward(qry, key, val)
    # 3) All-identity adapter (emb_dim == qry_dim) -> pure rearrange, no kernel.
    ident = AdapterPallas("b c h w -> b (h w) c", qry_dim=C, rng_key=k_param)
    q2, k2, v2 = ident.forward(qry, key, val)
    # 4) Ragged pixel tiling (HW=324 is not a multiple of the 128-row tile).
    qr = jax.random.normal(k_r, (1, C, 18, 18), dtype=jnp.float32)
    q3, k3, v3 = adapter.forward(qr)
    # 5) bf16 end-to-end with lane-dense emb_dim (realistic config).
    adapter_bf = AdapterPallas("b c h w -> b (h w) c", qry_dim=8, emb_dim=128,
                               rng_key=k_param2)
    qb = jax.random.normal(k_b, (2, 8, 16, 16), dtype=jnp.bfloat16)
    q4, k4, v4 = adapter_bf.forward(qb)

    jax.block_until_ready((q0, k0, v0, q1, k1, v1, q2, k2, v2, q3, k3, v3,
                           q4, k4, v4))

    checks = [
        (q0, qry, adapter.w_q), (k0, qry, adapter.w_k), (v0, qry, adapter.w_v),
        (q1, qry, adapter.w_q), (k1, key, adapter.w_k), (v1, val, adapter.w_v),
    ]
    for got, x, w in checks:
        assert got.shape == (B, H * W, EMB)
        assert jnp.allclose(got, _reference_adapter(x, w), **tol)
    for got, x in [(q2, qry), (k2, key), (v2, val)]:
        assert got.shape == (B, H * W, C)
        assert jnp.allclose(got, _reference_adapter(x, None), atol=1e-6, rtol=1e-6)
    for got, w in [(q3, adapter.w_q), (k3, adapter.w_k), (v3, adapter.w_v)]:
        assert got.shape == (1, 18 * 18, EMB)
        assert jnp.allclose(got, _reference_adapter(qr, w), **tol)
    for got, w in [(q4, adapter_bf.w_q), (k4, adapter_bf.w_k), (v4, adapter_bf.w_v)]:
        assert got.shape == (2, 256, 128)
        assert got.dtype == jnp.bfloat16
        assert jnp.allclose(got.astype(jnp.float32),
                            _reference_adapter(qb, w), atol=1.5e-1, rtol=5e-2)

    print("KERNEL_OK")
</pallas_src>

<mosaic_0001>
module attributes {stable_mosaic.version = 11 : i64} {
  func.func @kernel(%arg0: i32, %arg1: i32, %arg2: memref<1x4x128xf32, #tpu.memory_space<vmem>>, %arg3: memref<4x8xf32, #tpu.memory_space<vmem>>, %arg4: memref<4x8xf32, #tpu.memory_space<vmem>>, %arg5: memref<4x8xf32, #tpu.memory_space<vmem>>, %arg6: memref<1x128x8xf32, #tpu.memory_space<vmem>>, %arg7: memref<1x128x8xf32, #tpu.memory_space<vmem>>, %arg8: memref<1x128x8xf32, #tpu.memory_space<vmem>>) attributes {dimension_semantics = [#tpu.dimension_semantics<parallel>, #tpu.dimension_semantics<parallel>], iteration_bounds = array<i64: 2, 2>, scalar_prefetch = 0 : i64, scratch_operands = 0 : i64, tpu.core_type = #tpu.core_type<tc>, window_params = [{transform_indices = @transform_0, window_bounds = array<i64: 1, 4, 128>}, {pipeline_mode = #tpu.pipeline_mode<synchronous>, transform_indices = @transform_1, window_bounds = array<i64: 4, 8>}, {pipeline_mode = #tpu.pipeline_mode<synchronous>, transform_indices = @transform_2, window_bounds = array<i64: 4, 8>}, {pipeline_mode = #tpu.pipeline_mode<synchronous>, transform_indices = @transform_3, window_bounds = array<i64: 4, 8>}, {transform_indices = @transform_4, window_bounds = array<i64: 1, 128, 8>}, {transform_indices = @transform_5, window_bounds = array<i64: 1, 128, 8>}, {transform_indices = @transform_6, window_bounds = array<i64: 1, 128, 8>}]} {
    %c0 = arith.constant 0 : index
    %c0_0 = arith.constant 0 : index
    %c0_1 = arith.constant 0 : index
    %0 = vector.load %arg2[%c0, %c0_0, %c0_1] : memref<1x4x128xf32, #tpu.memory_space<vmem>>, vector<1x4x128xf32>
    %1 = vector.shape_cast %0 : vector<1x4x128xf32> to vector<4x128xf32>
    %c0_2 = arith.constant 0 : index
    %c0_3 = arith.constant 0 : index
    %2 = vector.load %arg3[%c0_2, %c0_3] : memref<4x8xf32, #tpu.memory_space<vmem>>, vector<4x8xf32>
    %cst = arith.constant dense<0.000000e+00> : vector<128x8xf32>
    %3 = tpu.matmul %1, %2, %cst {dimension_numbers = #tpu.dot_dimension_numbers<[0], [0], [1], [1], [0, 1, 1, 1], [], []>} : vector<4x128xf32>, vector<4x8xf32>, vector<128x8xf32> -> vector<128x8xf32>
    %c0_4 = arith.constant 0 : index
    %c0_5 = arith.constant 0 : index
    %c0_6 = arith.constant 0 : index
    %4 = vector.load %arg6[%c0_4, %c0_5, %c0_6] : memref<1x128x8xf32, #tpu.memory_space<vmem>>, vector<1x128x8xf32>
    %5 = vector.shape_cast %4 : vector<1x128x8xf32> to vector<128x8xf32>
    %6 = vector.shape_cast %3 : vector<128x8xf32> to vector<1x128x8xf32>
    tpu.vector_store %arg6[%c0_4, %c0_5, %c0_6], %6 {strides = array<i32>} : memref<1x128x8xf32, #tpu.memory_space<vmem>>, vector<1x128x8xf32>,
    %c0_7 = arith.constant 0 : index
    %c0_8 = arith.constant 0 : index
    %c0_9 = arith.constant 0 : index
    %7 = vector.load %arg2[%c0_7, %c0_8, %c0_9] : memref<1x4x128xf32, #tpu.memory_space<vmem>>, vector<1x4x128xf32>
    %8 = vector.shape_cast %7 : vector<1x4x128xf32> to vector<4x128xf32>
    %c0_10 = arith.constant 0 : index
    %c0_11 = arith.constant 0 : index
    %9 = vector.load %arg4[%c0_10, %c0_11] : memref<4x8xf32, #tpu.memory_space<vmem>>, vector<4x8xf32>
    %cst_12 = arith.constant dense<0.000000e+00> : vector<128x8xf32>
    %10 = tpu.matmul %8, %9, %cst_12 {dimension_numbers = #tpu.dot_dimension_numbers<[0], [0], [1], [1], [0, 1, 1, 1], [], []>} : vector<4x128xf32>, vector<4x8xf32>, vector<128x8xf32> -> vector<128x8xf32>
    %c0_13 = arith.constant 0 : index
    %c0_14 = arith.constant 0 : index
    %c0_15 = arith.constant 0 : index
    %11 = vector.load %arg7[%c0_13, %c0_14, %c0_15] : memref<1x128x8xf32, #tpu.memory_space<vmem>>, vector<1x128x8xf32>
    %12 = vector.shape_cast %11 : vector<1x128x8xf32> to vector<128x8xf32>
    %13 = vector.shape_cast %10 : vector<128x8xf32> to vector<1x128x8xf32>
    tpu.vector_store %arg7[%c0_13, %c0_14, %c0_15], %13 {strides = array<i32>} : memref<1x128x8xf32, #tpu.memory_space<vmem>>, vector<1x128x8xf32>,
    %c0_16 = arith.constant 0 : index
    %c0_17 = arith.constant 0 : index
    %c0_18 = arith.constant 0 : index
    %14 = vector.load %arg2[%c0_16, %c0_17, %c0_18] : memref<1x4x128xf32, #tpu.memory_space<vmem>>, vector<1x4x128xf32>
    %15 = vector.shape_cast %14 : vector<1x4x128xf32> to vector<4x128xf32>
    %c0_19 = arith.constant 0 : index
    %c0_20 = arith.constant 0 : index
    %16 = vector.load %arg5[%c0_19, %c0_20] : memref<4x8xf32, #tpu.memory_space<vmem>>, vector<4x8xf32>
    %cst_21 = arith.constant dense<0.000000e+00> : vector<128x8xf32>
    %17 = tpu.matmul %15, %16, %cst_21 {dimension_numbers = #tpu.dot_dimension_numbers<[0], [0], [1], [1], [0, 1, 1, 1], [], []>} : vector<4x128xf32>, vector<4x8xf32>, vector<128x8xf32> -> vector<128x8xf32>
    %c0_22 = arith.constant 0 : index
    %c0_23 = arith.constant 0 : index
    %c0_24 = arith.constant 0 : index
    %18 = vector.load %arg8[%c0_22, %c0_23, %c0_24] : memref<1x128x8xf32, #tpu.memory_space<vmem>>, vector<1x128x8xf32>
    %19 = vector.shape_cast %18 : vector<1x128x8xf32> to vector<128x8xf32>
    %20 = vector.shape_cast %17 : vector<128x8xf32> to vector<1x128x8xf32>
    tpu.vector_store %arg8[%c0_22, %c0_23, %c0_24], %20 {strides = array<i32>} : memref<1x128x8xf32, #tpu.memory_space<vmem>>, vector<1x128x8xf32>,
    return
  }
  func.func @transform_0(%arg0: i32, %arg1: i32) -> (i32, i32, i32) {
    %c0_i32 = arith.constant 0 : i32
    %c0_i32_0 = arith.constant 0 : i32
    return %arg0, %c0_i32, %arg1 : i32, i32, i32
  }
  func.func @transform_1(%arg0: i32, %arg1: i32) -> (i32, i32) {
    %c0_i32 = arith.constant 0 : i32
    %c0_i32_0 = arith.constant 0 : i32
    %c0_i32_1 = arith.constant 0 : i32
    return %c0_i32, %c0_i32_0 : i32, i32
  }
  func.func @transform_2(%arg0: i32, %arg1: i32) -> (i32, i32) {
    %c0_i32 = arith.constant 0 : i32
    %c0_i32_0 = arith.constant 0 : i32
    %c0_i32_1 = arith.constant 0 : i32
    return %c0_i32, %c0_i32_0 : i32, i32
  }
  func.func @transform_3(%arg0: i32, %arg1: i32) -> (i32, i32) {
    %c0_i32 = arith.constant 0 : i32
    %c0_i32_0 = arith.constant 0 : i32
    %c0_i32_1 = arith.constant 0 : i32
    return %c0_i32, %c0_i32_0 : i32, i32
  }
  func.func @transform_4(%arg0: i32, %arg1: i32) -> (i32, i32, i32) {
    %c0_i32 = arith.constant 0 : i32
    %c0_i32_0 = arith.constant 0 : i32
    return %arg0, %arg1, %c0_i32 : i32, i32, i32
  }
  func.func @transform_5(%arg0: i32, %arg1: i32) -> (i32, i32, i32) {
    %c0_i32 = arith.constant 0 : i32
    %c0_i32_0 = arith.constant 0 : i32
    return %arg0, %arg1, %c0_i32 : i32, i32, i32
  }
  func.func @transform_6(%arg0: i32, %arg1: i32) -> (i32, i32, i32) {
    %c0_i32 = arith.constant 0 : i32
    %c0_i32_0 = arith.constant 0 : i32
    return %arg0, %arg1, %c0_i32 : i32, i32, i32
  }
}

</mosaic_0001>

<bundles_post_ra>
// kernel: tpu_custom_call.1
= control target key start
LH: loop header
LB: loop body
LE: loop exit
PB: predicated region body
PF: predicated region fallthrough
CT: control target
= control target key end

     0   :  { %s2120_s0 = inlined_call_operand.hbm [shape: f32[2,4,256], index: 0, kind: input, shape index: {}]   ;;  %s2121_s1 = inlined_call_operand.hbm [shape: f32[4,8], index: 1, kind: input, shape index: {}]   ;;  %s2122_s2 = inlined_call_operand.vmem [shape: f32[4,8], index: 2, kind: input, shape index: {}]   ;;  %s2123_s3 = inlined_call_operand.vmem [shape: f32[4,8], index: 3, kind: input, shape index: {}]   ;;  %s2124_s4 = inlined_call_operand.vmem [shape: f32[2,256,8], index: 4, kind: output, shape index: {0}]   ;;  %s2125_s5 = inlined_call_operand.vmem [shape: f32[2,256,8], index: 5, kind: output, shape index: {1}]   ;;  %s2126_s6 = inlined_call_operand.vmem [shape: f32[2,256,8], index: 6, kind: output, shape index: {2}]  }
   0x1   :  { %2132 = sst [smem:[#allocation9_spill]] %s2121_s1 }
   0x2   :  { %2133 = sst [smem:[#allocation10_spill]] %s2125_s5 }
   0x3   :  { %2134 = sst [smem:[#allocation11_spill]] %s2126_s6 }
   0x4   :  { %12 = vsyncpa [#allocation3], 0 }
   0x5   :  { %14 = vsyncpa [#allocation3 + $0x1], 0 }
   0x6   :  { %15 = vsyncpa [#allocation5], 0  ;;  %s1758_s21 = smov 0   ;;  %s1760_s22 = smov 0  }
   0x7   :  { %s1762_s23 = smov 0   ;;  %s1764_s24 = smov 0  }
   0x8   :  { %s1766_s25 = smov 0   ;;  %s1768_s26 = smov 0  }
   0x9   :  { %s1770_s27 = smov 0   ;;  %s1772_s28 = smov 0  }
   0xa LB: > { %s1304_s29 = sadd.s32 4294967295, %s1719_s28   ;;  %p55_p0 = scmp.ne.s32.totalorder %s1695_s22, %s1691_s21  ;;  %s1719_s28 = sphi %s1772_s28, %s21_s28   ;;  %s1715_s27 = sphi %s1770_s27, %s2155_s27   ;;  %s1711_s26 = sphi %s1768_s26, %s2154_s26   ;;  %s1707_s25 = sphi %s1766_s25, %s2153_s25   ;;  %s1703_s24 = sphi %s1764_s24, %s2152_s24   ;;  %s1699_s23 = sphi %s1762_s23, %s2151_s23   ;;  %s1695_s22 = sphi %s1760_s22, %s2150_s22   ;;  %s1691_s21 = sphi %s1758_s21, %s2149_s21  }
   0xb   : > { %p1798_p1 = scmp.eq.s32.totalorder %s1304_s29, 0  ;;  %p1306_p2 = scmp.ge.s32.totalorder %s1719_s28, 1 }
   0xc   : > { %p213_p3 = scmp.lt.s32.totalorder %s1719_s28, 5  ;;  %s1721_s9 = smov [#allocation4]  }
   0xd   : > { %s2135_s30 = scalar_select %p1798_p1, 1, 0 }
   0xe   : > { %p1806_p4 = por %p1798_p1, %p55_p0  ;;  %p1810_p5 = pnand %p1306_p2, %p213_p3 }
   0xf   : > { %s226_s10 = sshll.u32 %s1721_s9, 4  ;;  %s30_s12 = sadd.s32 1, %s1711_s26  ;;  %s227_s10 = int_to_ptr.vmem [resolvable:$true] %s226_s10 }
  0x10   : > { %s2136_s7 = scalar_select %p1806_p4, 1, 0 }
  0x11   : > { %s2137_s8 = scalar_select %p1810_p5, 1, 0 }
  0x12   : > { %p1514_p6 = pneg %p1810_p5  ;;  %s2139_s1 = sld [smem:[#allocation9_spill]] }
  0x14   : > { %p1818_p7 = pnand %p1514_p6, %p1798_p1 }
  0x16   : > { %p1593_p9 = pneg %p1818_p7 }
  0x18   : > { %s1591_s15 = scalar_lea.hbm %s2139_s1, 64 }
  0x19   : > { %p1592_p8 = scmp.ne.s32.totalorder %s2139_s1, %s1591_s15  ;;  %p1598_p12 = scmp.lt.u32.totalorder %s1591_s15, %s2139_s1 }
  0x1b   : > { %p1594_p10 = pnand %p1593_p9, %p1592_p8 }
  0x1d   : > { %p1595_p11 = pneg %p1594_p10 }
  0x1f   : > { %p1600_p13 = pnand %p1598_p12, %p1595_p11 }
  0x21   : > { %1603 = shalt.err (!%p1600_p13)
}
  0x22   : > { %s1604_s20 = scalar_lea.vmem %s227_s10, 64  ;;  %p1612_p6 = scmp.lt.s32.totalorder %s227_s10, %s227_s10 }
  0x23   : > { %p1605_p0 = scmp.ne.s32.totalorder %s227_s10, %s1604_s20  ;;  %p1613_p1 = scmp.lt.s32.totalorder %s1604_s20, %s1604_s20 }
  0x25   : > { %p1607_p2 = pnand %p1605_p0, %p1593_p9  ;;  %p1614_p4 = por %p1613_p1, %p1612_p6 }
  0x27   : > { %p1608_p3 = pneg %p1607_p2 }
  0x29   : > { %p1615_p5 = pnand %p1614_p4, %p1608_p3 }
  0x2b   : > { %1618 = shalt.err (!%p1615_p5)
}
  0x2c   : > { %1517 = dma.hbm_to_vmem [thread:$0]  (!%p1818_p7), %s2139_s1, 64, %s227_s10, [#allocation5]  }
  0x2d   : > { %p31_p8 = scmp.ge.s32.totalorder %s30_s12, 2  ;;  %s33_s9 = sadd.s32 1, %s1715_s27 }
  0x2e   : > { %s42_s13 = sadd.s32 1, %s1699_s23  ;;  %p49_p1 = scmp.ne.s32.totalorder %s1699_s23, %s1695_s22 }
  0x2f   : > { %s2157_s12 = smov (%p31_p8, %s30_s12), 0  ;;  %s2159_s9 = smov (!%p31_p8, %s33_s9), %s1715_s27 }
  0x30   : > { %2140 = sst [smem:[#allocation8_spill]] %s2157_s12  ;;  %p50_p4 = scmp.eq.s32.totalorder %s1719_s28, 0 }
  0x31   : > { %p35_p5 = scmp.ge.s32.totalorder %s2159_s9, 2  ;;  %s38_s11 = ssub.s32 %s1711_s26, %s2157_s12 }
  0x32   : > { %p1523_p9 = scmp.lt.s32.totalorder %s1719_s28, 4  ;;  %s243_s14 = sand.u32 1, %s1699_s23  }
  0x33   : > { %s2161_s9 = smov (%p35_p5, %s2159_s9), 0  ;;  %p1853_p7 = por %p50_p4, %p49_p1 }
  0x34   : > { %s1309_s15 = sshll.u32 %s243_s14, 2  ;;  %s37_s16 = ssub.s32 %s1715_s27, %s2161_s9 }
  0x35   : > { %s39_s17 = sor.u32 %s38_s11, %s37_s16  ;;  %s1310_s18 = sshll.u32 %s1715_s27, 1 }
  0x36   : > { %p40_p10 = scmp.eq.s32.totalorder %s39_s17, 0  ;;  %s252_s19 = sadd.s32 %s1711_s26, %s1310_s18 }
  0x37   : > { %s1311_s20 = sshll.u32 %s252_s19, 6  ;;  %s247_s21 = scalar_lea.vmem [#allocation2], %s1309_s15 }
  0x38   : > { %s256_s29 = sshll.u32 %s247_s21, 4  ;;  %s1867_s6 = scalar_lea.hbm %s2120_s0, %s1311_s20  ;;  %s1869_s29 = int_to_ptr.vmem [resolvable:$true] %s256_s29 }
  0x39   : > { %s1862_s1 = scalar_select %p40_p10, %s1699_s23, %s42_s13  }
  0x3a   : > { %p1875_p11 = pnand %p1523_p9, %p1853_p7  ;;  %s244_s13 = scalar_lea.sflag [#allocation3], %s243_s14 }
  0x3b   : > { %s1619_s15 = scalar_lea.hbm %s1867_s6, 64  ;;  %s1624_s10 = scalar_lea.hbm %s2120_s0, 256 }
  0x3c   : > { %p1620_p12 = scmp.ne.s32.totalorder %s1867_s6, %s1619_s15  ;;  %p1621_p13 = pneg %p1875_p11 }
  0x3d   : > { %p1625_p3 = scmp.lt.u32.totalorder %s1867_s6, %s2120_s0  ;;  %p1626_p6 = scmp.lt.u32.totalorder %s1624_s10, %s1619_s15 }
  0x3e   : > { %p1622_p0 = pnand %p1621_p13, %p1620_p12  ;;  %p1628_p1 = scmp.lt.u32.totalorder %s1619_s15, %s1867_s6 }
  0x3f   : > { %p1627_p8 = por %p1626_p6, %p1625_p3 }
  0x40   : > { %p1623_p2 = pneg %p1622_p0 }
  0x41   : > { %p1629_p4 = por %p1628_p1, %p1627_p8 }
  0x43   : > { %p1630_p5 = pnand %p1629_p4, %p1623_p2 }
  0x45   : > { %1633 = shalt.err (!%p1630_p5)
}
  0x46   : > { %s1634_s14 = scalar_lea.vmem %s1869_s29, 64  ;;  %s1722_s18 = smov [#allocation2]  }
  0x47   : > { %p1635_p9 = scmp.ne.s32.totalorder %s1869_s29, %s1634_s14  ;;  %s1639_s19 = sshll.u32 %s1722_s18, 4  ;;  %s1640_s19 = int_to_ptr.vmem [resolvable:$false] %s1639_s19 }
  0x48   : > { %s1641_s20 = scalar_lea.vmem %s1640_s19, 128  ;;  %p1642_p12 = scmp.lt.s32.totalorder %s1869_s29, %s1640_s19 }
  0x49   : > { %p1637_p7 = pnand %p1635_p9, %p1621_p13  ;;  %p1643_p0 = scmp.lt.s32.totalorder %s1641_s20, %s1634_s14 }
  0x4b   : > { %p1638_p10 = pneg %p1637_p7  ;;  %p1644_p3 = por %p1643_p0, %p1642_p12 }
  0x4d   : > { %p1645_p6 = pnand %p1644_p3, %p1638_p10 }
  0x4f   : > { %1648 = shalt.err (!%p1645_p6)
}
  0x50   : > { %1521 = dma.hbm_to_vmem [thread:$0]  (!%p1875_p11), %s1867_s6, 64, %s1869_s29, %s244_s13  }
  0x51   : > { %p2143_p2 = scmp.ne.s32.totalorder %s2137_s8, 0 }
  0x52   : > { %s267_s21 = sand.u32 (!%p2143_p2), 1, %s1695_s22   ;;  %p2144_p13 = scmp.ne.s32.totalorder (!%p2143_p2), %s2136_s7, 0 }
  0x53   : > { %265 = sbr.rel (%p2143_p2) target bundleno = 562 (0x232), region = 36  ;;  %s1313_s15 = sshll.u32 (!%p2143_p2), %s267_s21, 2 }
  0x54   : > { %s268_s5 = scalar_lea.sflag (!%p2143_p2), [#allocation3], %s267_s21  ;;  %s271_s12 = scalar_lea.vmem (!%p2143_p2), [#allocation2], %s1313_s15 }
  0x5a   : > { %1682 = dma.done.wait (%p2144_p13), %s268_s5, 64  }
  0x5b   : > { %1684 = vsyncadd (%p2144_p13), %s268_s5, 4294967232  ;;  %p2145_p8 = scmp.ne.s32.totalorder %s2135_s30, 0 }
  0x5d   : > { %1686 = dma.done.wait (%p2145_p8), [#allocation5], 64  }
  0x5e   : > { %1688 = vsyncadd (%p2145_p8), [#allocation5], 4294967232  ;;  %v356_v0 = vld [vmem:[%s271_s12] sm:$0xf]  ;;  %v357_v2 = vld [vmem:[#allocation4] sm:$0xf] }
  0x5f   : > { %v851_v1 = vld [vmem:[%s271_s12] sm:$0xf]  ;;  %358 = vxpose.xlu0.b32.start.end [1/1] (short) %v356_v0, 128  ;;  %vm439_vm0 = vcmask 1043456   ;;  %vm390_vm1 = vcmask 31744   ;;  %s1315_s29 = sshll.u32 %s1703_s24, 4  ;;  %p327_p11 = scmp.lt.s32.totalorder %s1707_s25, 1 }
  0x60   : > { %853 = vxpose.xlu1.b32.start.end [1/1] (short) %v851_v1, 128  ;;  %1428 = vmatprep.subr.msk.mxu0 %vm439_vm0, %v357_v2  ;;  %v605_v3 = vld [vmem:[%s271_s12] sm:$0xf]  ;;  %p329_p1 = scmp.lt.s32.totalorder %s1315_s29, 31  ;;  %vm588_vm2 = vcmask 64512   ;;  %s2146_s18 = sld [smem:[#allocation11_spill]] }
  0x61   : > { %1506 = vmatprep.subr.msk.mxu1 %vm439_vm0, %v357_v2  ;;  %1429 = vmatpush3.msk.msra.mxu0 %vm439_vm0, %v357_v2  ;;  %v852_v4 = vld [vmem:[%s2123_s3] sm:$0xf]  ;;  %s2163_s25 = smov (!%p327_p11, %s1707_s25), 1  ;;  %s2147_s15 = sld [smem:[#allocation10_spill]] }
  0x62   : > { %1507 = vmatpush3.msk.msra.mxu1 %vm439_vm0, %v357_v2  ;;  %v606_v5 = vld [vmem:[%s2122_s2] sm:$0xf]  ;;  %1480 = vmatprep.subr.msk.mxu0 %vm439_vm0, %v852_v4  ;;  %s2165_s29 = smov (!%p329_p1, %s1315_s29), 31  ;;  %s1316_s11 = sshll.u32 %s2163_s25, 5 }
  0x63   : > { %1454 = vmatprep.subr.msk.mxu1 %vm439_vm0, %v606_v5  ;;  %s332_s13 = sadd.s32 %s1316_s11, %s2165_s29 }
  0x64   : > { %s1980_s10 = sshll.u32 %s332_s13, 3 }
  0x65   : > { %s1986_s14 = scalar_lea.vmem %s2124_s4, %s1980_s10 }
  0x66   : > { %s2008_s19 = scalar_lea.vmem %s2146_s18, %s1980_s10 }
  0x67   : > { %s2062_s5 = scalar_lea.vmem %s2147_s15, %s1980_s10 }
  0x9c   : > { %607 = vxpose.xlu0.b32.start.end [1/1] (short) %v605_v3, 128 }
  0xdf   : > { %v374_v6 = vpop.trf.xlu0 }
  0xe0   : > { %v869_v7 = vpop.trf.xlu1  ;;  %1430 = vmatprep.mubr.msk.f32.mxu0 %vm390_vm1, %v374_v6 }
  0xe3   : > { %v375_v8 = vpop.trf.xlu0 }
  0xe4   : > { %v870_v9 = vpop.trf.xlu1  ;;  %1431 = vmatmul.mubr.msk.f32.vlgmr.msra.gmra.mrb[0].mxu0 %vm390_vm1, %v375_v8 }
  0xe5   : > { %1481 = vmatpush3.msk.msra.mxu0 %vm439_vm0, %v852_v4 }
  0xe7   : > { %v376_v10 = vpop.trf.xlu0 }
  0xe8   : > { %v871_v11 = vpop.trf.xlu1  ;;  %1433 = vmatprep.mubr.msk.f32.mxu0 %vm390_vm1, %v376_v10 }
  0xeb   : > { %v377_v12 = vpop.trf.xlu0 }
  0xec   : > { %v872_v13 = vpop.trf.xlu1  ;;  %1434 = vmatmul.mubr.msk.f32.gmra.mrb[2].mxu0 %vm390_vm1, %v377_v12 }
  0xef   : > { %v378_v14 = vpop.trf.xlu0 }
  0xf0   : > { %v873_v15 = vpop.trf.xlu1  ;;  %1436 = vmatprep.mubr.msk.f32.mxu0 %vm390_vm1, %v378_v14 }
  0xf3   : > { %v379_v16 = vpop.trf.xlu0 }
  0xf4   : > { %v874_v17 = vpop.trf.xlu1  ;;  %1437 = vmatmul.mubr.msk.f32.gmra.mrb[4].mxu0 %vm390_vm1, %v379_v16 }
  0xf7   : > { %v380_v18 = vpop.trf.xlu0 }
  0xf8   : > { %v875_v19 = vpop.trf.xlu1  ;;  %1439 = vmatprep.mubr.msk.f32.mxu0 %vm390_vm1, %v380_v18 }
  0xfb   : > { %v381_v20 = vpop.trf.xlu0 }
  0xfc   : > { %v876_v21 = vpop.trf.xlu1  ;;  %1440 = vmatmul.mubr.msk.f32.gmra.mrb[6].mxu0 %vm390_vm1, %v381_v20 }
  0xfd   : > { %1482 = vmatprep.mubr.msk.f32.mxu0 %vm390_vm1, %v869_v7 }
  0xff   : > { %v382_v22 = vpop.trf.xlu0 }
 0x100   : > { %v877_v23 = vpop.trf.xlu1  ;;  %1442 = vmatprep.mubr.msk.f32.mxu1 %vm390_vm1, %v382_v22  ;;  %1483 = vmatmul.mubr.msk.f32.vlgmr.msra.gmra.mrb[8].mxu0 %vm390_vm1, %v870_v9 }
 0x101   : > { %1485 = vmatprep.mubr.msk.f32.mxu0 %vm390_vm1, %v871_v11 }
 0x103   : > { %v383_v24 = vpop.trf.xlu0 }
 0x104   : > { %v878_v25 = vpop.trf.xlu1  ;;  %1443 = vmatmul.mubr.msk.f32.vlgmr.msra.gmra.mrb[0].mxu1 %vm390_vm1, %v383_v24  ;;  %1486 = vmatmul.mubr.msk.f32.gmra.mrb[10].mxu0 %vm390_vm1, %v872_v13 }
 0x105   : > { %1455 = vmatpush3.msk.msra.mxu1 %vm439_vm0, %v606_v5  ;;  %1488 = vmatprep.mubr.msk.f32.mxu0 %vm390_vm1, %v873_v15 }
 0x107   : > { %v384_v26 = vpop.trf.xlu0 }
 0x108   : > { %v879_v27 = vpop.trf.xlu1  ;;  %1445 = vmatprep.mubr.msk.f32.mxu1 %vm390_vm1, %v384_v26  ;;  %1489 = vmatmul.mubr.msk.f32.gmra.mrb[12].mxu0 %vm390_vm1, %v874_v17 }
 0x109   : > { %1491 = vmatprep.mubr.msk.f32.mxu0 %vm390_vm1, %v875_v19 }
 0x10b   : > { %v385_v28 = vpop.trf.xlu0 }
 0x10c   : > { %v880_v29 = vpop.trf.xlu1  ;;  %1446 = vmatmul.mubr.msk.f32.gmra.mrb[2].mxu1 %vm390_vm1, %v385_v28  ;;  %1492 = vmatmul.mubr.msk.f32.gmra.mrb[14].mxu0 %vm390_vm1, %v876_v21 }
 0x10d   : > { %1494 = vmatprep.mubr.msk.f32.mxu0 %vm390_vm1, %v877_v23 }
 0x10f   : > { %v386_v30 = vpop.trf.xlu0 }
 0x110   : > { %v881_v31 = vpop.trf.xlu1  ;;  %1448 = vmatprep.mubr.msk.f32.mxu1 %vm390_vm1, %v386_v30  ;;  %1495 = vmatmul.mubr.msk.f32.gmra.mrb[16].mxu0 %vm390_vm1, %v878_v25 }
 0x111   : > { %1497 = vmatprep.mubr.msk.f32.mxu0 %vm390_vm1, %v879_v27 }
 0x113   : > { %v387_v32 = vpop.trf.xlu0 }
 0x114   : > { %v882_v33 = vpop.trf.xlu1  ;;  %1449 = vmatmul.mubr.msk.f32.gmra.mrb[4].mxu1 %vm390_vm1, %v387_v32  ;;  %1498 = vmatmul.mubr.msk.f32.gmra.mrb[18].mxu0 %vm390_vm1, %v880_v29 }
 0x115   : > { %1500 = vmatprep.mubr.msk.f32.mxu0 %vm390_vm1, %v881_v31 }
 0x117   : > { %v388_v34 = vpop.trf.xlu0 }
 0x118   : > { %v883_v35 = vpop.trf.xlu1  ;;  %1451 = vmatprep.mubr.msk.f32.mxu1 %vm390_vm1, %v388_v34  ;;  %1501 = vmatmul.mubr.msk.f32.gmra.mrb[20].mxu0 %vm390_vm1, %v882_v33 }
 0x119   : > { %1503 = vmatprep.mubr.msk.f32.mxu0 %vm390_vm1, %v883_v35 }
 0x11b   : > { %v389_v36 = vpop.trf.xlu0 }
 0x11c   : > { %v884_v37 = vpop.trf.xlu1  ;;  %1452 = vmatmul.mubr.msk.f32.gmra.mrb[6].mxu1 %vm390_vm1, %v389_v36 }
 0x11d   : > { %1504 = vmatmul.mubr.msk.f32.gmra.mrb[22].mxu0 %vm390_vm1, %v884_v37 }
 0x11f   : > { %v623_v38 = vpop.trf.xlu0 }
 0x120   : > { %1456 = vmatprep.mubr.msk.f32.mxu1 %vm390_vm1, %v623_v38 }
 0x123   : > { %v624_v39 = vpop.trf.xlu0 }
 0x124   : > { %1457 = vmatmul.mubr.msk.f32.vlgmr.msra.gmra.mrb[8].mxu1 %vm390_vm1, %v624_v39 }
 0x127   : > { %v625_v40 = vpop.trf.xlu0 }
 0x128   : > { %1459 = vmatprep.mubr.msk.f32.mxu1 %vm390_vm1, %v625_v40 }
 0x12b   : > { %v626_v41 = vpop.trf.xlu0 }
 0x12c   : > { %1460 = vmatmul.mubr.msk.f32.gmra.mrb[10].mxu1 %vm390_vm1, %v626_v41 }
 0x12f   : > { %v627_v42 = vpop.trf.xlu0 }
 0x130   : > { %1462 = vmatprep.mubr.msk.f32.mxu1 %vm390_vm1, %v627_v42 }
 0x133   : > { %v628_v43 = vpop.trf.xlu0 }
 0x134   : > { %1463 = vmatmul.mubr.msk.f32.gmra.mrb[12].mxu1 %vm390_vm1, %v628_v43 }
 0x137   : > { %v629_v44 = vpop.trf.xlu0 }
 0x138   : > { %1465 = vmatprep.mubr.msk.f32.mxu1 %vm390_vm1, %v629_v44 }
 0x13b   : > { %v630_v45 = vpop.trf.xlu0 }
 0x13c   : > { %1466 = vmatmul.mubr.msk.f32.gmra.mrb[14].mxu1 %vm390_vm1, %v630_v45 }
 0x13f   : > { %v631_v46 = vpop.trf.xlu0 }
 0x140   : > { %1468 = vmatprep.mubr.msk.f32.mxu1 %vm390_vm1, %v631_v46 }
 0x143   : > { %v632_v47 = vpop.trf.xlu0 }
 0x144   : > { %1469 = vmatmul.mubr.msk.f32.gmra.mrb[16].mxu1 %vm390_vm1, %v632_v47 }
 0x147   : > { %v633_v48 = vpop.trf.xlu0 }
 0x148   : > { %1471 = vmatprep.mubr.msk.f32.mxu1 %vm390_vm1, %v633_v48 }
 0x14b   : > { %v634_v49 = vpop.trf.xlu0 }
 0x14c   : > { %1472 = vmatmul.mubr.msk.f32.gmra.mrb[18].mxu1 %vm390_vm1, %v634_v49 }
 0x14f   : > { %v635_v50 = vpop.trf.xlu0 }
 0x150   : > { %1474 = vmatprep.mubr.msk.f32.mxu1 %vm390_vm1, %v635_v50 }
 0x153   : > { %v636_v51 = vpop.trf.xlu0 }
 0x154   : > { %1475 = vmatmul.mubr.msk.f32.gmra.mrb[20].mxu1 %vm390_vm1, %v636_v51 }
 0x157   : > { %v637_v52 = vpop.trf.xlu0 }
 0x158   : > { %1477 = vmatprep.mubr.msk.f32.mxu1 %vm390_vm1, %v637_v52 }
 0x15b   : > { %v638_v53 = vpop.trf.xlu0 }
 0x15c   : > { %1478 = vmatmul.mubr.msk.f32.gmra.mrb[22].mxu1 %vm390_vm1, %v638_v53 }
 0x1b7   : > { %v1432_v54 = vpop.f32.mrb[0].mxu0 }
 0x1b8   : > { %590 = vst.msk [vmem:[%s1986_s14 + $0x8] sm:$0xff] %vm588_vm2, %v1432_v54  ;;  %v509_v55 = vpop.f32.mrb[1].mxu0 }
 0x1b9   : > { %589 = vst.msk [vmem:[%s1986_s14] sm:$0xff] %vm588_vm2, %v509_v55 }
 0x1bf   : > { %v1435_v56 = vpop.f32.mrb[2].mxu0 }
 0x1c0   : > { %592 = vst.msk [vmem:[%s1986_s14 + $0x18] sm:$0xff] %vm588_vm2, %v1435_v56  ;;  %v519_v57 = vpop.f32.mrb[3].mxu0 }
 0x1c1   : > { %591 = vst.msk [vmem:[%s1986_s14 + $0x10] sm:$0xff] %vm588_vm2, %v519_v57 }
 0x1c7   : > { %v1438_v58 = vpop.f32.mrb[4].mxu0 }
 0x1c8   : > { %594 = vst.msk [vmem:[%s1986_s14 + $0x28] sm:$0xff] %vm588_vm2, %v1438_v58  ;;  %v529_v59 = vpop.f32.mrb[5].mxu0 }
 0x1c9   : > { %593 = vst.msk [vmem:[%s1986_s14 + $0x20] sm:$0xff] %vm588_vm2, %v529_v59 }
 0x1cf   : > { %v1441_v60 = vpop.f32.mrb[6].mxu0 }
 0x1d0   : > { %596 = vst.msk [vmem:[%s1986_s14 + $0x38] sm:$0xff] %vm588_vm2, %v1441_v60  ;;  %v539_v61 = vpop.f32.mrb[7].mxu0 }
 0x1d1   : > { %595 = vst.msk [vmem:[%s1986_s14 + $0x30] sm:$0xff] %vm588_vm2, %v539_v61 }
 0x1d3   : > { %v1484_v62 = vpop.f32.mrb[8].mxu0 }
 0x1d4   : > { %1082 = vst.msk [vmem:[%s2008_s19 + $0x8] sm:$0xff] %vm588_vm2, %v1484_v62  ;;  %v1002_v63 = vpop.f32.mrb[9].mxu0 }
 0x1d5   : > { %1081 = vst.msk [vmem:[%s2008_s19] sm:$0xff] %vm588_vm2, %v1002_v63 }
 0x1d7   : > { %v1444_v0 = vpop.f32.mrb[0].mxu1  ;;  %v1487_v1 = vpop.f32.mrb[10].mxu0 }
 0x1d8   : > { %598 = vst.msk [vmem:[%s1986_s14 + $0x48] sm:$0xff] %vm588_vm2, %v1444_v0  ;;  %v549_v2 = vpop.f32.mrb[1].mxu1  ;;  %1084 = vst.msk [vmem:[%s2008_s19 + $0x18] sm:$0xff] %vm588_vm2, %v1487_v1  ;;  %v1012_v3 = vpop.f32.mrb[11].mxu0 }
 0x1d9   : > { %597 = vst.msk [vmem:[%s1986_s14 + $0x40] sm:$0xff] %vm588_vm2, %v549_v2  ;;  %1083 = vst.msk [vmem:[%s2008_s19 + $0x10] sm:$0xff] %vm588_vm2, %v1012_v3 }
 0x1db   : > { %v1490_v4 = vpop.f32.mrb[12].mxu0 }
 0x1dc   : > { %1086 = vst.msk [vmem:[%s2008_s19 + $0x28] sm:$0xff] %vm588_vm2, %v1490_v4  ;;  %v1022_v5 = vpop.f32.mrb[13].mxu0 }
 0x1dd   : > { %1085 = vst.msk [vmem:[%s2008_s19 + $0x20] sm:$0xff] %vm588_vm2, %v1022_v5 }
 0x1df   : > { %v1447_v6 = vpop.f32.mrb[2].mxu1  ;;  %v1493_v7 = vpop.f32.mrb[14].mxu0 }
 0x1e0   : > { %600 = vst.msk [vmem:[%s1986_s14 + $0x58] sm:$0xff] %vm588_vm2, %v1447_v6  ;;  %v559_v8 = vpop.f32.mrb[3].mxu1  ;;  %1088 = vst.msk [vmem:[%s2008_s19 + $0x38] sm:$0xff] %vm588_vm2, %v1493_v7  ;;  %v1032_v9 = vpop.f32.mrb[15].mxu0 }
 0x1e1   : > { %599 = vst.msk [vmem:[%s1986_s14 + $0x50] sm:$0xff] %vm588_vm2, %v559_v8  ;;  %1087 = vst.msk [vmem:[%s2008_s19 + $0x30] sm:$0xff] %vm588_vm2, %v1032_v9 }
 0x1e3   : > { %v1496_v10 = vpop.f32.mrb[16].mxu0 }
 0x1e4   : > { %1090 = vst.msk [vmem:[%s2008_s19 + $0x48] sm:$0xff] %vm588_vm2, %v1496_v10  ;;  %v1042_v11 = vpop.f32.mrb[17].mxu0 }
 0x1e5   : > { %1089 = vst.msk [vmem:[%s2008_s19 + $0x40] sm:$0xff] %vm588_vm2, %v1042_v11 }
 0x1e7   : > { %v1450_v12 = vpop.f32.mrb[4].mxu1  ;;  %v1499_v13 = vpop.f32.mrb[18].mxu0 }
 0x1e8   : > { %602 = vst.msk [vmem:[%s1986_s14 + $0x68] sm:$0xff] %vm588_vm2, %v1450_v12  ;;  %v569_v14 = vpop.f32.mrb[5].mxu1  ;;  %1092 = vst.msk [vmem:[%s2008_s19 + $0x58] sm:$0xff] %vm588_vm2, %v1499_v13  ;;  %v1052_v15 = vpop.f32.mrb[19].mxu0 }
 0x1e9   : > { %601 = vst.msk [vmem:[%s1986_s14 + $0x60] sm:$0xff] %vm588_vm2, %v569_v14  ;;  %1091 = vst.msk [vmem:[%s2008_s19 + $0x50] sm:$0xff] %vm588_vm2, %v1052_v15 }
 0x1eb   : > { %v1502_v16 = vpop.f32.mrb[20].mxu0 }
 0x1ec   : > { %1094 = vst.msk [vmem:[%s2008_s19 + $0x68] sm:$0xff] %vm588_vm2, %v1502_v16  ;;  %v1062_v17 = vpop.f32.mrb[21].mxu0 }
 0x1ed   : > { %1093 = vst.msk [vmem:[%s2008_s19 + $0x60] sm:$0xff] %vm588_vm2, %v1062_v17 }
 0x1ef   : > { %v1453_v18 = vpop.f32.mrb[6].mxu1 }
 0x1f0   : > { %v1505_v19 = vpop.f32.mrb[22].mxu0  ;;  %604 = vst.msk [vmem:[%s1986_s14 + $0x78] sm:$0xff] %vm588_vm2, %v1453_v18  ;;  %v579_v20 = vpop.f32.mrb[7].mxu1 }
 0x1f1   : > { %1096 = vst.msk [vmem:[%s2008_s19 + $0x78] sm:$0xff] %vm588_vm2, %v1505_v19  ;;  %v1072_v21 = vpop.f32.mrb[23].mxu0  ;;  %603 = vst.msk [vmem:[%s1986_s14 + $0x70] sm:$0xff] %vm588_vm2, %v579_v20 }
 0x1f2   : > { %1095 = vst.msk [vmem:[%s2008_s19 + $0x70] sm:$0xff] %vm588_vm2, %v1072_v21 }
 0x1f7   : > { %v1458_v22 = vpop.f32.mrb[8].mxu1 }
 0x1f8   : > { %836 = vst.msk [vmem:[%s2062_s5 + $0x8] sm:$0xff] %vm588_vm2, %v1458_v22  ;;  %v756_v23 = vpop.f32.mrb[9].mxu1 }
 0x1f9   : > { %835 = vst.msk [vmem:[%s2062_s5] sm:$0xff] %vm588_vm2, %v756_v23 }
 0x1ff   : > { %v1461_v24 = vpop.f32.mrb[10].mxu1 }
 0x200   : > { %838 = vst.msk [vmem:[%s2062_s5 + $0x18] sm:$0xff] %vm588_vm2, %v1461_v24  ;;  %v766_v25 = vpop.f32.mrb[11].mxu1 }
 0x201   : > { %837 = vst.msk [vmem:[%s2062_s5 + $0x10] sm:$0xff] %vm588_vm2, %v766_v25 }
 0x207   : > { %v1464_v26 = vpop.f32.mrb[12].mxu1 }
 0x208   : > { %840 = vst.msk [vmem:[%s2062_s5 + $0x28] sm:$0xff] %vm588_vm2, %v1464_v26  ;;  %v776_v27 = vpop.f32.mrb[13].mxu1 }
 0x209   : > { %839 = vst.msk [vmem:[%s2062_s5 + $0x20] sm:$0xff] %vm588_vm2, %v776_v27 }
 0x20f   : > { %v1467_v28 = vpop.f32.mrb[14].mxu1 }
 0x210   : > { %842 = vst.msk [vmem:[%s2062_s5 + $0x38] sm:$0xff] %vm588_vm2, %v1467_v28  ;;  %v786_v29 = vpop.f32.mrb[15].mxu1 }
 0x211   : > { %841 = vst.msk [vmem:[%s2062_s5 + $0x30] sm:$0xff] %vm588_vm2, %v786_v29 }
 0x217   : > { %v1470_v30 = vpop.f32.mrb[16].mxu1 }
 0x218   : > { %844 = vst.msk [vmem:[%s2062_s5 + $0x48] sm:$0xff] %vm588_vm2, %v1470_v30  ;;  %v796_v31 = vpop.f32.mrb[17].mxu1 }
 0x219   : > { %843 = vst.msk [vmem:[%s2062_s5 + $0x40] sm:$0xff] %vm588_vm2, %v796_v31 }
 0x21f   : > { %v1473_v32 = vpop.f32.mrb[18].mxu1 }
 0x220   : > { %846 = vst.msk [vmem:[%s2062_s5 + $0x58] sm:$0xff] %vm588_vm2, %v1473_v32  ;;  %v806_v33 = vpop.f32.mrb[19].mxu1 }
 0x221   : > { %845 = vst.msk [vmem:[%s2062_s5 + $0x50] sm:$0xff] %vm588_vm2, %v806_v33 }
 0x227   : > { %v1476_v34 = vpop.f32.mrb[20].mxu1 }
 0x228   : > { %848 = vst.msk [vmem:[%s2062_s5 + $0x68] sm:$0xff] %vm588_vm2, %v1476_v34  ;;  %v816_v35 = vpop.f32.mrb[21].mxu1 }
 0x229   : > { %847 = vst.msk [vmem:[%s2062_s5 + $0x60] sm:$0xff] %vm588_vm2, %v816_v35 }
 0x22f   : > { %v1479_v36 = vpop.f32.mrb[22].mxu1 }
 0x230   : > { %850 = vst.msk [vmem:[%s2062_s5 + $0x78] sm:$0xff] %vm588_vm2, %v1479_v36  ;;  %v826_v37 = vpop.f32.mrb[23].mxu1 }
 0x231   : > { %849 = vst.msk [vmem:[%s2062_s5 + $0x70] sm:$0xff] %vm588_vm2, %v826_v37 }
 0x232 PF: > { %s21_s28 = sadd.s32 1, %s1719_s28   ;;  %s2148_s12 = sld [smem:[#allocation8_spill]] }
 0x233   : > { %p18_p4 = scmp.ge.s32.totalorder %s21_s28, 6   ;;  %s2149_s21 = smov %s1695_s22 }
 0x234   : > { %s2150_s22 = smov %s1699_s23  ;;  %s2151_s23 = smov %s1862_s1 }
 0x235   : > { %s2152_s24 = smov %s1711_s26  ;;  %s2153_s25 = smov %s1715_s27 }
 0x236   : > { %s2155_s27 = smov %s2161_s9  ;;  %20 = sbr.rel (!%p18_p4) target bundleno = 10 (0xa), region = 104 }
 0x238   : > { %s2154_s26 = smov %s2148_s12 }
 0x23d   :  { %1177 = vsyncpa [#allocation3], 1 }
 0x23e   :  { %1179 = vsyncpa [#allocation3 + $0x1], 1 }
 0x23f   :  { %1180 = vsyncpa [#allocation5], 1 }

</bundles_post_ra>
